<compile_context>
chip_gen: v7x
topology: tpu7x:2x2x1
jax: 0.10.0
libtpu: 0.0.40
codegen_flags: <defaults>
</compile_context>

<pallas_src>
import functools

import jax
import jax.numpy as jnp
from jax.experimental import pallas as pl


def _adv_mnd_kernel(f_ref, w_ref, b_ref, out_ref, *, n_src, src_scale, tgt_scale):
    # f_ref: (N, D) f32 | w_ref: (D, Cp) f32 | b_ref: (1, Cp) f32 | out_ref: (N, Cp) f32
    # MXU matmul with f32 accumulation.
    y = jnp.dot(f_ref[...], w_ref[...], preferred_element_type=jnp.float32)
    y = y + b_ref[...]

    # Per-row temperature scale: rows [0, n_src) are the source half,
    # rows [n_src, N) the target half.  Folds feature_temp / logit_temp
    # divisions into a single multiply.
    row = jax.lax.broadcasted_iota(jnp.int32, (y.shape[0], 1), 0)
    scale = jnp.where(row < n_src, jnp.float32(src_scale), jnp.float32(tgt_scale))
    y = y * scale

    # Row softmax in f32.  Padded classes carry a -1e9 bias (finite, not -inf),
    # so exp(pad - max) == 0 and they do not perturb the row sums.
    m = jnp.max(y, axis=1, keepdims=True)
    e = jnp.exp(y - m)
    inv = pl.reciprocal(jnp.sum(e, axis=1, keepdims=True), approx=False)
    out_ref[...] = e * inv


def adversarial_loss_mnd(f, labels_s, W, b, *, feature_normal=True,
                         feature_temp=2.0, logit_temp=2.0):
    """Returns (loss, labels) matching AdversarialLoss_MND.forward (weight_type=0)."""
    N, D = f.shape
    C = W.shape[1]
    # torch .chunk(2, dim=0): source gets ceil(N/2) rows, target the rest.
    n_src = (N + 1) // 2
    n_tgt = N - n_src

    # Fold all temperature divisions into per-half constant scales.
    inv_ft = (1.0 / float(feature_temp)) if feature_normal else 1.0
    src_scale = inv_ft
    tgt_scale = inv_ft / float(logit_temp)

    # Lane-dense class dimension: pad C up to a multiple of 128.  Padded weight
    # columns are zero; padded bias entries are a large finite negative so the
    # padded classes get exactly 0 softmax probability (no -inf -> no NaN risk
    # in the max-subtraction).
    Cp = max(128, ((C + 127) // 128) * 128)
    pad_c = Cp - C
    f32 = f.astype(jnp.float32)
    w_pad = jnp.pad(W.astype(jnp.float32), ((0, 0), (0, pad_c)))
    b_pad = jnp.pad(b.astype(jnp.float32).reshape(1, C), ((0, 0), (0, pad_c)),
                    constant_values=-1e9)

    kernel = functools.partial(
        _adv_mnd_kernel,
        n_src=n_src,
        src_scale=float(src_scale),
        tgt_scale=float(tgt_scale),
    )

    cost = pl.CostEstimate(
        flops=2 * N * D * Cp,
        transcendentals=N * Cp,                              # exps
        bytes_accessed=4 * (N * D + D * Cp + Cp + N * Cp),
    )

    # Single grid step, whole-array blocks resident in VMEM: one DMA-in per
    # operand, one matmul, one lane-dense (N, 128) store.
    probs = pl.pallas_call(
        kernel,
        out_shape=jax.ShapeDtypeStruct((N, Cp), jnp.float32),
        cost_estimate=cost,
    )(f32, w_pad, b_pad)

    src_logit = probs[:n_src, :C]          # softmax(y_s)
    tgt_logit = probs[n_src:, :C]          # softmax(y_t / logit_temp)

    # softmax with positive temperature is monotone -> argmax(tgt_logit) == argmax(y_t).
    pseudo_label_t = jnp.argmax(tgt_logit, axis=1).astype(labels_s.dtype)
    labels = jnp.concatenate([labels_s, pseudo_label_t], axis=0)

    # TODO(synk): nuclear norm (SVD) has no Pallas TPU lowering; computed in plain JAX.
    # TODO(synk): weight_type == 1 memory-queue path (mutable host-side buffers) not implemented.
    nuc = lambda m: jnp.sum(jnp.linalg.svd(m, compute_uv=False))
    loss_cls_target = -(nuc(tgt_logit) - nuc(src_logit)) / n_tgt
    return loss_cls_target, labels


if __name__ == "__main__":
    key = jax.random.PRNGKey(0)
    batch, bottle_neck, num_classes = 8, 32, 8

    kf, kl, kw, kb = jax.random.split(key, 4)
    # f stacks source and target features: (2*batch, bottle_neck)
    f = jax.random.normal(kf, (2 * batch, bottle_neck), dtype=jnp.float32)
    labels_s = jax.random.randint(kl, (batch,), 0, num_classes, dtype=jnp.int32)
    # Deterministic synthetic classifier parameters (nn.Linear(bottle_neck, num_classes)).
    W = 0.1 * jax.random.normal(kw, (bottle_neck, num_classes), dtype=jnp.float32)
    b = 0.01 * jax.random.normal(kb, (num_classes,), dtype=jnp.float32)

    loss, labels = adversarial_loss_mnd(
        f, labels_s, W, b,
        feature_normal=True, feature_temp=2.0, logit_temp=2.0,
    )
    jax.block_until_ready((loss, labels))
    print("KERNEL_OK")
</pallas_src>

<mosaic_0001>
module attributes {stable_mosaic.version = 11 : i64} {
  func.func @_adv_mnd_kernel(%arg0: memref<16x32xf32, #tpu.memory_space<vmem>>, %arg1: memref<32x128xf32, #tpu.memory_space<vmem>>, %arg2: memref<1x128xf32, #tpu.memory_space<vmem>>, %arg3: memref<16x128xf32, #tpu.memory_space<vmem>>) attributes {dimension_semantics = [], scalar_prefetch = 0 : i64, scratch_operands = 0 : i64, tpu.core_type = #tpu.core_type<tc>} {
    %c0 = arith.constant 0 : index
    %c0_0 = arith.constant 0 : index
    %0 = vector.load %arg0[%c0, %c0_0] : memref<16x32xf32, #tpu.memory_space<vmem>>, vector<16x32xf32>
    %c0_1 = arith.constant 0 : index
    %c0_2 = arith.constant 0 : index
    %1 = vector.load %arg1[%c0_1, %c0_2] : memref<32x128xf32, #tpu.memory_space<vmem>>, vector<32x128xf32>
    %cst = arith.constant dense<0.000000e+00> : vector<16x128xf32>
    %2 = tpu.matmul %0, %1, %cst {dimension_numbers = #tpu.dot_dimension_numbers<[1], [0], [0], [1], [0, 0, 1, 1], [], []>} : vector<16x32xf32>, vector<32x128xf32>, vector<16x128xf32> -> vector<16x128xf32>
    %c0_3 = arith.constant 0 : index
    %c0_4 = arith.constant 0 : index
    %3 = vector.load %arg2[%c0_3, %c0_4] : memref<1x128xf32, #tpu.memory_space<vmem>>, vector<1x128xf32>
    %4 = vector.broadcast %3 : vector<1x128xf32> to vector<16x128xf32>
    %5 = arith.addf %2, %4 : vector<16x128xf32>
    %6 = tpu.iota {dimensions = array<i32: 0>} : vector<16x1xi32>
    %c8_i32 = arith.constant 8 : i32
    %7 = vector.broadcast %c8_i32 : i32 to vector<16x1xi32>
    %8 = arith.cmpi slt, %6, %7 : vector<16x1xi32>
    %cst_5 = arith.constant 5.000000e-01 : f32
    %cst_6 = arith.constant 2.500000e-01 : f32
    %9 = vector.broadcast %cst_5 : f32 to vector<16x1xf32>
    %10 = vector.broadcast %cst_6 : f32 to vector<16x1xf32>
    %11 = arith.select %8, %9, %10 : vector<16x1xi1>, vector<16x1xf32>
    %12 = vector.broadcast %11 : vector<16x1xf32> to vector<16x128xf32>
    %13 = arith.mulf %5, %12 : vector<16x128xf32>
    %cst_7 = arith.constant dense<0xFF800000> : vector<16xf32>
    %14 = vector.multi_reduction <maximumf>, %13, %cst_7 [1] : vector<16x128xf32> to vector<16xf32>
    %15 = vector.shape_cast %14 : vector<16xf32> to vector<16x1xf32>
    %16 = vector.broadcast %15 : vector<16x1xf32> to vector<16x128xf32>
    %17 = arith.subf %13, %16 : vector<16x128xf32>
    %18 = math.exp %17 : vector<16x128xf32>
    %cst_8 = arith.constant dense<0.000000e+00> : vector<16xf32>
    %19 = vector.multi_reduction <add>, %18, %cst_8 [1] : vector<16x128xf32> to vector<16xf32>
    %20 = vector.shape_cast %19 : vector<16xf32> to vector<16x1xf32>
    %21 = tpu.reciprocal %20 : vector<16x1xf32> -> vector<16x1xf32>
    %22 = vector.broadcast %21 : vector<16x1xf32> to vector<16x128xf32>
    %23 = arith.mulf %18, %22 : vector<16x128xf32>
    %c0_9 = arith.constant 0 : index
    %c0_10 = arith.constant 0 : index
    %24 = vector.load %arg3[%c0_9, %c0_10] : memref<16x128xf32, #tpu.memory_space<vmem>>, vector<16x128xf32>
    tpu.vector_store %arg3[%c0_9, %c0_10], %23 {strides = array<i32>} : memref<16x128xf32, #tpu.memory_space<vmem>>, vector<16x128xf32>,
    return
  }
}

</mosaic_0001>

<bundles_post_ra>
// kernel: tpu_custom_call.1
= control target key start
LH: loop header
LB: loop body
LE: loop exit
PB: predicated region body
PF: predicated region fallthrough
CT: control target
= control target key end

     0   :  { %8 = vsyncpa [#allocation3], 0  ;;  %s371_s0 = inlined_call_operand.hbm [shape: f32[16,32], index: 0, kind: input, shape index: {}]   ;;  %s372_s1 = inlined_call_operand.hbm [shape: f32[32,128], index: 1, kind: input, shape index: {}]   ;;  %s373_s2 = inlined_call_operand.vmem [shape: f32[1,128], index: 2, kind: input, shape index: {}]   ;;  %s374_s3 = inlined_call_operand.hbm [shape: f32[16,128], index: 3, kind: output, shape index: {}]  }
   0x1   :  { %9 = vsyncpa [#allocation6], 0 }
   0x2   :  { %10 = vsyncpa [#allocation4], 0  ;;  %s298_s12 = smov [#allocation2]   ;;  %s226_s16 = scalar_lea.hbm %s371_s0, 256 }
   0x3   :  { %s16_s13 = sshll.u32 %s298_s12, 4  ;;  %p227_p0 = scmp.ne.s32.totalorder %s371_s0, %s226_s16  ;;  %s17_s13 = int_to_ptr.vmem [resolvable:$true] %s16_s13 }
   0x4   :  { %p230_p1 = scmp.lt.u32.totalorder %s226_s16, %s371_s0 }
   0x6   :  { %p232_p2 = pnand %p230_p1, %p227_p0 }
   0x8   :  { %235 = shalt.err (!%p232_p2)
}
   0x9   :  { %s236_s21 = scalar_lea.vmem %s17_s13, 256  ;;  %p241_p4 = scmp.lt.s32.totalorder %s17_s13, %s17_s13 }
   0xa   :  { %p237_p3 = scmp.ne.s32.totalorder %s17_s13, %s236_s21  ;;  %p242_p5 = scmp.lt.s32.totalorder %s236_s21, %s236_s21 }
   0xc   :  { %p243_p6 = por %p242_p5, %p241_p4 }
   0xe   :  { %p244_p7 = pnand %p243_p6, %p237_p3 }
  0x10   :  { %247 = shalt.err (!%p244_p7)
}
  0x11   :  { %s299_s22 = smov 128   ;;  %s300_s23 = smov 8  }
  0x12   :  { %22 = dma.hbm_to_vmem [thread:$0]  %s371_s0, 256, %s17_s13, [#allocation3], %s299_s22, %s299_s22, %s300_s23  }
  0x13   :  { %s301_s26 = smov [#allocation5]   ;;  %s248_s30 = scalar_lea.hbm %s372_s1, 512 }
  0x14   :  { %s28_s27 = sshll.u32 %s301_s26, 4  ;;  %p249_p8 = scmp.ne.s32.totalorder %s372_s1, %s248_s30  ;;  %s29_s27 = int_to_ptr.vmem [resolvable:$true] %s28_s27 }
  0x15   :  { %p252_p9 = scmp.lt.u32.totalorder %s248_s30, %s372_s1 }
  0x17   :  { %p254_p10 = pnand %p252_p9, %p249_p8 }
  0x19   :  { %257 = shalt.err (!%p254_p10)
}
  0x1a   :  { %s258_s8 = scalar_lea.vmem %s29_s27, 512  ;;  %p263_p12 = scmp.lt.s32.totalorder %s29_s27, %s29_s27 }
  0x1b   :  { %p259_p11 = scmp.ne.s32.totalorder %s29_s27, %s258_s8  ;;  %p264_p13 = scmp.lt.s32.totalorder %s258_s8, %s258_s8 }
  0x1d   :  { %p265_p0 = por %p264_p13, %p263_p12 }
  0x1f   :  { %p266_p1 = pnand %p265_p0, %p259_p11 }
  0x21   :  { %269 = shalt.err (!%p266_p1)
}
  0x22   :  { %34 = dma.hbm_to_vmem [thread:$0]  %s372_s1, 512, %s29_s27, [#allocation6], %s299_s22, %s299_s22, %s300_s23  }
  0x23   :  { %292 = dma.done.wait [#allocation3], 256  }
  0x24   :  { %293 = vsyncadd [#allocation3], 4294967040 }
  0x25   :  { %294 = dma.done.wait [#allocation6], 512  }
  0x26   :  { %295 = vsyncadd [#allocation6], 4294966784  ;;  %vm56_vm0 = vcmask 261120   ;;  %v45_v0 = vld [vmem:[#allocation5] sm:$0xff]  ;;  %v46_v1 = vld [vmem:[#allocation5 + $0x8] sm:$0xff] }
  0x27   :  { %v47_v2 = vld [vmem:[#allocation5 + $0x10] sm:$0xff]  ;;  %v205_v3 = vpack.c.bf16 %v46_v1, %v45_v0  ;;  %v48_v4 = vld [vmem:[#allocation5 + $0x18] sm:$0xff] }
  0x28   :  { %v43_v5 = vld [vmem:[#allocation2] sm:$0xff]  ;;  %v209_v6 = vpack.c.bf16 %v48_v4, %v47_v2  ;;  %v44_v7 = vld [vmem:[#allocation2 + $0x8] sm:$0xff] }
  0x29   :  { %202 = vmatprep.mubr.msk.f32.mxu0 %vm56_vm0, %v43_v5  ;;  %206 = vmatprep.subr.bf16.mxu0 %v205_v3  ;;  %v185_v8 = vld [vmem:[%s373_s2] ss:$0 sm:$0xff]  ;;  %s302_s2 = smov [#allocation7]  }
  0x2a   :  { %208 = vmatpush3.bf16.msra.mxu0 %v205_v3  ;;  %s172_s11 = sshll.u32 %s302_s2, 4  ;;  %s173_s11 = int_to_ptr.vmem [resolvable:$true] %s172_s11 }
  0x2b   :  { %210 = vmatprep.subr.bf16.mxu0 %v209_v6  ;;  %s270_s12 = scalar_lea.vmem %s173_s11, 256  ;;  %p275_p3 = scmp.lt.s32.totalorder %s173_s11, %s173_s11 }
  0x2c   :  { %p271_p2 = scmp.ne.s32.totalorder %s173_s11, %s270_s12  ;;  %p276_p4 = scmp.lt.s32.totalorder %s270_s12, %s270_s12 }
  0x2e   :  { %212 = vmatpush3.bf16.msra.mxu0 %v209_v6  ;;  %p277_p5 = por %p276_p4, %p275_p3 }
  0x30   :  { %p278_p6 = pnand %p277_p5, %p271_p2 }
  0x31   :  { %203 = vmatmul.mubr.msk.f32.vlgmr.msra.gmra.mrb[0].mxu0 %vm56_vm0, %v44_v7 }
 0x104   :  { %v204_v9 = vpop.f32.mrb[0].mxu0 }
 0x105   :  { %v129_v10 = vpop.f32.mrb[1].mxu0  ;;  %v135_v12 = vadd.f32 %v204_v9, %v185_v8 }
 0x106   :  { %v130_v11 = vadd.f32 %v185_v8, %v129_v10 }
 0x107   :  { %v146_v14 = vmul.f32 0.25, %v135_v12 }
 0x108   :  { %v145_v13 = vmul.f32 0.5, %v130_v11 }
 0x10a   :  { %147 = vmax.xlane.f32.xlu0 %v145_v13 }
 0x10e   :  { %149 = vmax.xlane.f32.xlu0 %v146_v14 }
 0x197   :  { %v148_v15 = vpop.xlane.xlu0 %147 }
 0x198   :  { %v151_v16 = vsub.f32 %v145_v13, %v148_v15 }
 0x19a   :  { %v153_v17 = vmul.f32 1.442695, %v151_v16 }
 0x19b   :  { %v150_v18 = vpop.xlane.xlu0 %149 }
 0x19c   :  { %218 = vpow2.f32 %v153_v17  ;;  %v152_v19 = vsub.f32 %v146_v14, %v150_v18 }
 0x19e   :  { %v155_v20 = vmul.f32 1.442695, %v152_v19 }
 0x1a0   :  { %220 = vpow2.f32 %v155_v20 }
 0x1a6   :  { %v219_v21 = vpop.eup %218 }
 0x1a7   :  { %157 = vadd.xlane.f32.xlu1 %v219_v21 }
 0x1aa   :  { %v221_v22 = vpop.eup %220 }
 0x1ab   :  { %159 = vadd.xlane.f32.xlu1 %v221_v22 }
 0x234   :  { %v158_v23 = vpop.xlane.xlu1 %157 }
 0x235   :  { %222 = vrcp.f32 %v158_v23 }
 0x238   :  { %v160_v24 = vpop.xlane.xlu1 %159 }
 0x239   :  { %224 = vrcp.f32 %v160_v24 }
 0x23f   :  { %v223_v25 = vpop.eup %222 }
 0x240   :  { %v163_v26 = vmul.f32 %v223_v25, %v219_v21 }
 0x242   :  { %165 = vst [vmem:[#allocation7] sm:$0xff] %v163_v26 }
 0x243   :  { %v225_v27 = vpop.eup %224 }
 0x244   :  { %v164_v28 = vmul.f32 %v225_v27, %v221_v22 }
 0x246   :  { %166 = vst [vmem:[#allocation7 + $0x8] sm:$0xff] %v164_v28 }
 0x247   :  { %281 = shalt.err (!%p278_p6)
}
 0x248   :  { %s282_s15 = scalar_lea.hbm %s374_s3, 256 }
 0x249   :  { %p283_p7 = scmp.ne.s32.totalorder %s374_s3, %s282_s15  ;;  %p286_p8 = scmp.lt.u32.totalorder %s282_s15, %s374_s3 }
 0x24b   :  { %p288_p9 = pnand %p286_p8, %p283_p7 }
 0x24d   :  { %291 = shalt.err (!%p288_p9)
}
 0x24e   :  { %178 = dma.vmem_to_hbm [thread:$0]  %s173_s11, 256, %s374_s3, [#allocation4], %s299_s22, %s299_s22, %s300_s23  }
 0x24f   :  { %296 = dma.done.wait [#allocation4], 256  }
 0x250   :  { %297 = vsyncadd [#allocation4], 4294967040 }
 0x251   :  { %182 = vsyncpa [#allocation3], 1 }
 0x252   :  { %183 = vsyncpa [#allocation6], 1 }
 0x253   :  { %184 = vsyncpa [#allocation4], 1 }

</bundles_post_ra>
